<compile_context>
chip_gen: v7x
topology: tpu7x:2x2x1
jax: 0.10.0
libtpu: 0.0.40
codegen_flags: <defaults>
</compile_context>

<pallas_src>
import functools

import jax
import jax.numpy as jnp
from jax.experimental import pallas as pl
from jax.experimental.pallas import tpu as pltpu

TB_MAX = 128  # max batch tile (full MXU row occupancy; raise to 256 on v6e/v7x)


def _round_up(x, m):
    return (x + m - 1) // m * m


def _dcnet_kernel(x_ref, hmT_ref, mbias_ref, a2_ref, feff_ref, out_ref,
                  y1_ref, *, var_scale, n_pix):
    # Feature tile 0: acquisition + preprocessing + Tikhonov filter -> y1.
    @pl.when(pl.program_id(1) == 0)
    def _():
        x = x_ref[...]                                                # (tb, N) f32
        # m = x @ (Hm.T / alpha) + (1/alpha - 1) * (Hm @ 1)
        m = jnp.dot(x.astype(jnp.bfloat16), hmT_ref[...],
                    preferred_element_type=jnp.float32)               # (tb, M)
        m = m + mbias_ref[...]
        # var = (2/alpha^2) * (sum(x) + N)  -- per-row scalar (XLU reduction)
        var = var_scale * (jnp.sum(x, axis=-1, keepdims=True) + n_pix)  # (tb, 1)
        a2 = a2_ref[...]                                              # (1, M)
        y1_ref[...] = (a2 / (a2 + var)) * m                           # (tb, M)

    # Every feature tile: rec[:, tile] = y1 @ Feff[:, tile]
    # (completion layer + inverse Hadamard + 1/N already fused into Feff).
    out_ref[...] = jnp.dot(y1_ref[...].astype(jnp.bfloat16), feff_ref[...],
                           preferred_element_type=jnp.float32)


def hadamard_matrix(n):
    h = jnp.array([[1.0]], dtype=jnp.float32)
    h2 = jnp.array([[1.0, 1.0], [1.0, -1.0]], dtype=jnp.float32)
    while h.shape[0] < n:
        h = jnp.kron(h, h2)
    return h


def build_dcnet_params(key, h_img, M, alpha=1.0):
    """Deterministic synthetic parameters matching DCNet.__init__ shapes."""
    N = h_img * h_img
    k_perm, k_sig = jax.random.split(key)

    had = hadamard_matrix(N)                          # (N, N), +/-1
    perm = jax.random.permutation(k_perm, N)          # measurement ordering
    F = had[perm, :]                                  # permuted Hadamard (N, N)
    Hm = F[:M, :]                                     # measurement matrix (M, N)

    a = jax.random.normal(k_sig, (N, N), dtype=jnp.float32)
    sigma = a @ a.T / N + 0.1 * jnp.eye(N, dtype=jnp.float32)   # covariance prior
    sigma_perm = sigma[perm][:, perm]                 # Perm @ sigma @ Perm.T

    # Denoise_layer weight = sqrt(diag(Sigma)[:M]);  kernel only needs its square.
    var_prior = jnp.diag(sigma_perm)[:M]
    # comp nn.Linear weight: W = Sigma21 @ inv(Sigma1), shape (N-M, M)
    Sigma1 = sigma_perm[:M, :M]
    Sigma21 = sigma_perm[M:, :M]
    W = (Sigma21 @ jnp.linalg.inv(Sigma1)).astype(jnp.float32)

    h1 = Hm @ jnp.ones((N,), jnp.float32)             # (M,) prep correction

    # ---- fused kernel weights (host-side precompute) ----------------------
    hmT_f32 = (Hm.T / alpha).astype(jnp.float32)                         # (N, M)
    mbias_f32 = ((1.0 / alpha - 1.0) * h1)[None, :].astype(jnp.float32)  # (1, M)
    feff_f32 = ((F[:M, :] + W.T @ F[M:, :]) / N).astype(jnp.float32)     # (M, N)

    return dict(
        alpha=float(alpha), N=N, M=M,
        var_scale=float(2.0 / (alpha * alpha)),
        # kernel weights (bf16: Hadamard +/-1 entries are exact in bf16)
        hmT=hmT_f32.astype(jnp.bfloat16),
        mbias=mbias_f32,
        a2=var_prior[None, :].astype(jnp.float32),
        feff=feff_f32.astype(jnp.bfloat16),
        # f32 copies + original un-fused operators (host-side verification only)
        hmT_f32=hmT_f32, feff_f32=feff_f32,
        ref=dict(
            pposT=jnp.maximum(Hm, 0.0).T, pnegT=jnp.maximum(-Hm, 0.0).T,
            h1=h1[None, :], wT=W.T, ftop=F[:M, :], fbot=F[M:, :],
        ),
    )


def dcnet_forward(x, params, *, tb_max=TB_MAX, tn=None):
    """x: (B, C, H, W) float32 in [-1, 1]  ->  (B, C, H, W) reconstruction."""
    B, C, h_img, w_img = x.shape
    N, M = params["N"], params["M"]
    assert h_img * w_img == N
    bc = B * C

    tb = min(tb_max, _round_up(bc, 8))                # batch tile (sublane-aligned)
    if tn is None:
        tn = min(N, 512)                              # lane-dense feature tile
    assert N % tn == 0 and (tn % 128 == 0 or tn == N)
    n_ft = N // tn

    xf = x.reshape(bc, N).astype(jnp.float32)
    pad = (-bc) % tb
    xp = jnp.pad(xf, ((0, pad), (0, 0)))
    nb = xp.shape[0] // tb

    kernel = functools.partial(_dcnet_kernel,
                               var_scale=params["var_scale"], n_pix=float(N))

    # VMEM working set (double-buffered pipeline buffers + scratch) + headroom.
    vmem_bytes = (2 * tb * N * 4            # x tile (f32)
                  + 2 * N * M * 2           # Hm.T (bf16, constant index -> 1 DMA)
                  + 2 * 2 * 8 * M * 4       # mbias + a2 (sublane-padded)
                  + 2 * M * tn * 2          # Feff feature tile (bf16)
                  + 2 * tb * tn * 4         # output tile (f32)
                  + tb * M * 4)             # y1 scratch
    vmem_limit = min(64 << 20, max(int(1.5 * vmem_bytes) + (4 << 20), 32 << 20))

    # NOTE: the weight BlockSpecs have constant index maps, so they are DMA'd
    # only once; single-buffering them (pipeline_mode=pl.Buffered(1)) would
    # additionally halve their VMEM allocation but is left out for portability.
    out = pl.pallas_call(
        kernel,
        out_shape=jax.ShapeDtypeStruct((xp.shape[0], N), jnp.float32),
        grid_spec=pltpu.PrefetchScalarGridSpec(
            num_scalar_prefetch=0,
            grid=(nb, n_ft),
            in_specs=[
                pl.BlockSpec((tb, N), lambda i, j: (i, 0)),   # x tile (per batch tile)
                pl.BlockSpec((N, M), lambda i, j: (0, 0)),    # Hm.T / alpha  (bf16)
                pl.BlockSpec((1, M), lambda i, j: (0, 0)),    # (1/alpha - 1) * Hm@1
                pl.BlockSpec((1, M), lambda i, j: (0, 0)),    # sigma_prior^2
                pl.BlockSpec((M, tn), lambda i, j: (0, j)),   # Feff feature tile (bf16)
            ],
            out_specs=pl.BlockSpec((tb, tn), lambda i, j: (i, j)),
            scratch_shapes=[pltpu.VMEM((tb, M), jnp.float32)],  # y1 (reused over j)
        ),
        compiler_params=pltpu.CompilerParams(
            dimension_semantics=("parallel", "arbitrary"),
            vmem_limit_bytes=vmem_limit),
    )(xp, params["hmT"], params["mbias"], params["a2"], params["feff"])

    return out[:bc].reshape(B, C, h_img, w_img)


def _fused_math(xf, hmT, mbias, a2, feff, var_scale, n_pix, weight_dtype):
    """Pure-JAX version of the fused kernel math (dtype-configurable)."""
    m = jnp.dot(xf.astype(weight_dtype), hmT.astype(weight_dtype),
                preferred_element_type=jnp.float32) + mbias
    var = var_scale * (jnp.sum(xf, axis=-1, keepdims=True) + n_pix)
    y1 = (a2 / (a2 + var)) * m
    return jnp.dot(y1.astype(weight_dtype), feff.astype(weight_dtype),
                   preferred_element_type=jnp.float32)


def dcnet_reference(x, params):
    """Dtype-matched (bf16 weights, f32 accumulation) reference of the kernel."""
    B, C, h_img, w_img = x.shape
    N = params["N"]
    xf = x.reshape(B * C, N).astype(jnp.float32)
    rec = _fused_math(xf, params["hmT"], params["mbias"], params["a2"],
                      params["feff"], params["var_scale"], float(N),
                      jnp.bfloat16)
    return rec.reshape(B, C, h_img, w_img)


def dcnet_reference_unfused(x, params):
    """Original (un-fused) DCNet pipeline in f32: acquisition -> prep -> Tikhonov."""
    B, C, h_img, w_img = x.shape
    N, M, alpha = params["N"], params["M"], params["alpha"]
    r = params["ref"]
    xf = x.reshape(B * C, N).astype(jnp.float32)
    x_img = (xf + 1.0) * 0.5                       # NoNoise normalization
    y_pos = x_img @ r["pposT"]
    y_neg = x_img @ r["pnegT"]
    m = 2.0 * (y_pos - y_neg) / alpha - r["h1"]    # SplitPoisson (x_0 = 0)
    var = 4.0 * (y_pos + y_neg) / (alpha * alpha)
    y1 = (params["a2"] / (params["a2"] + var)) * m  # tikho * data consistency
    y2 = y1 @ r["wT"]                               # completion layer
    Fm = jnp.concatenate([r["ftop"], r["fbot"]], axis=0)
    rec = (jnp.concatenate([y1, y2], axis=-1) @ Fm) / N   # inverse transform
    return rec.reshape(B, C, h_img, w_img)


if __name__ == "__main__":
    B, C, h_img = 2, 1, 16           # N = 256 pixels, M = 128 measurements
    M = 128

    key = jax.random.PRNGKey(0)
    k_par, k_x = jax.random.split(key)
    params = build_dcnet_params(k_par, h_img, M, alpha=1.0)

    x = jax.random.uniform(k_x, (B, C, h_img, h_img),
                           minval=-1.0, maxval=1.0, dtype=jnp.float32)

    # tn=128 -> two feature tiles, exercising the (batch, feature) grid.
    out = dcnet_forward(x, params, tn=128)
    out = jax.block_until_ready(out)

    # 1) kernel vs dtype-matched fused reference (tight tolerance).
    ref = dcnet_reference(x, params)
    assert out.shape == (B, C, h_img, h_img)
    assert out.dtype == jnp.float32
    assert jnp.allclose(out, ref, atol=2e-3, rtol=2e-3), \
        float(jnp.max(jnp.abs(out - ref)))

    # 2) fused algebra (f32 weights) vs the original un-fused DCNet pipeline:
    #    validates that the host-side fusions preserve the module semantics.
    xf = x.reshape(B * C, params["N"]).astype(jnp.float32)
    fused_f32 = _fused_math(xf, params["hmT_f32"], params["mbias"],
                            params["a2"], params["feff_f32"],
                            params["var_scale"], float(params["N"]),
                            jnp.float32)
    unfused = dcnet_reference_unfused(x, params).reshape(B * C, params["N"])
    assert jnp.allclose(fused_f32, unfused, atol=5e-3, rtol=5e-3), \
        float(jnp.max(jnp.abs(fused_f32 - unfused)))

    print("KERNEL_OK")
</pallas_src>

<mosaic_0001>
module attributes {stable_mosaic.version = 11 : i64} {
  func.func @_dcnet_kernel(%arg0: i32, %arg1: i32, %arg2: memref<8x256xf32, #tpu.memory_space<vmem>>, %arg3: memref<256x128xbf16, #tpu.memory_space<vmem>>, %arg4: memref<1x128xf32, #tpu.memory_space<vmem>>, %arg5: memref<1x128xf32, #tpu.memory_space<vmem>>, %arg6: memref<128x128xbf16, #tpu.memory_space<vmem>>, %arg7: memref<8x128xf32, #tpu.memory_space<vmem>>, %arg8: memref<8x128xf32, #tpu.memory_space<vmem>>) attributes {dimension_semantics = [#tpu.dimension_semantics<parallel>, #tpu.dimension_semantics<arbitrary>], iteration_bounds = array<i64: 1, 2>, scalar_prefetch = 0 : i64, scratch_operands = 1 : i64, tpu.core_type = #tpu.core_type<tc>, window_params = [{transform_indices = @transform_0, window_bounds = array<i64: 8, 256>}, {pipeline_mode = #tpu.pipeline_mode<synchronous>, transform_indices = @transform_1, window_bounds = array<i64: 256, 128>}, {pipeline_mode = #tpu.pipeline_mode<synchronous>, transform_indices = @transform_2, window_bounds = array<i64: 1, 128>}, {pipeline_mode = #tpu.pipeline_mode<synchronous>, transform_indices = @transform_3, window_bounds = array<i64: 1, 128>}, {transform_indices = @transform_4, window_bounds = array<i64: 128, 128>}, {transform_indices = @transform_5, window_bounds = array<i64: 8, 128>}]} {
    %c0_i32 = arith.constant 0 : i32
    %0 = arith.cmpi eq, %arg1, %c0_i32 : i32
    %1 = arith.extui %0 : i1 to i32
    %c0_i32_0 = arith.constant 0 : i32
    %2 = arith.cmpi ne, %1, %c0_i32_0 : i32
    scf.if %2 {
      %c0_6 = arith.constant 0 : index
      %c0_7 = arith.constant 0 : index
      %8 = vector.load %arg2[%c0_6, %c0_7] : memref<8x256xf32, #tpu.memory_space<vmem>>, vector<8x256xf32>
      %9 = arith.truncf %8 : vector<8x256xf32> to vector<8x256xbf16>
      %c0_8 = arith.constant 0 : index
      %c0_9 = arith.constant 0 : index
      %10 = vector.load %arg3[%c0_8, %c0_9] : memref<256x128xbf16, #tpu.memory_space<vmem>>, vector<256x128xbf16>
      %cst_10 = arith.constant dense<0.000000e+00> : vector<8x128xf32>
      %11 = tpu.matmul %9, %10, %cst_10 {dimension_numbers = #tpu.dot_dimension_numbers<[1], [0], [0], [1], [0, 0, 1, 1], [], []>} : vector<8x256xbf16>, vector<256x128xbf16>, vector<8x128xf32> -> vector<8x128xf32>
      %c0_11 = arith.constant 0 : index
      %c0_12 = arith.constant 0 : index
      %12 = vector.load %arg4[%c0_11, %c0_12] : memref<1x128xf32, #tpu.memory_space<vmem>>, vector<1x128xf32>
      %13 = vector.broadcast %12 : vector<1x128xf32> to vector<8x128xf32>
      %14 = arith.addf %11, %13 : vector<8x128xf32>
      %cst_13 = arith.constant dense<0.000000e+00> : vector<8xf32>
      %15 = vector.multi_reduction <add>, %8, %cst_13 [1] : vector<8x256xf32> to vector<8xf32>
      %16 = vector.shape_cast %15 : vector<8xf32> to vector<8x1xf32>
      %cst_14 = arith.constant 2.560000e+02 : f32
      %17 = vector.broadcast %cst_14 : f32 to vector<8x1xf32>
      %18 = arith.addf %16, %17 : vector<8x1xf32>
      %cst_15 = arith.constant 2.000000e+00 : f32
      %19 = vector.broadcast %cst_15 : f32 to vector<8x1xf32>
      %20 = arith.mulf %19, %18 : vector<8x1xf32>
      %c0_16 = arith.constant 0 : index
      %c0_17 = arith.constant 0 : index
      %21 = vector.load %arg5[%c0_16, %c0_17] : memref<1x128xf32, #tpu.memory_space<vmem>>, vector<1x128xf32>
      %22 = vector.broadcast %21 : vector<1x128xf32> to vector<8x128xf32>
      %23 = vector.broadcast %20 : vector<8x1xf32> to vector<8x128xf32>
      %24 = arith.addf %22, %23 : vector<8x128xf32>
      %25 = vector.broadcast %21 : vector<1x128xf32> to vector<8x128xf32>
      %26 = arith.divf %25, %24 : vector<8x128xf32>
      %27 = arith.mulf %26, %14 : vector<8x128xf32>
      %c0_18 = arith.constant 0 : index
      %c0_19 = arith.constant 0 : index
      %28 = vector.load %arg8[%c0_18, %c0_19] : memref<8x128xf32, #tpu.memory_space<vmem>>, vector<8x128xf32>
      tpu.vector_store %arg8[%c0_18, %c0_19], %27 {strides = array<i32>} : memref<8x128xf32, #tpu.memory_space<vmem>>, vector<8x128xf32>,
    } else {
    }
    %c0 = arith.constant 0 : index
    %c0_1 = arith.constant 0 : index
    %3 = vector.load %arg8[%c0, %c0_1] : memref<8x128xf32, #tpu.memory_space<vmem>>, vector<8x128xf32>
    %4 = arith.truncf %3 : vector<8x128xf32> to vector<8x128xbf16>
    %c0_2 = arith.constant 0 : index
    %c0_3 = arith.constant 0 : index
    %5 = vector.load %arg6[%c0_2, %c0_3] : memref<128x128xbf16, #tpu.memory_space<vmem>>, vector<128x128xbf16>
    %cst = arith.constant dense<0.000000e+00> : vector<8x128xf32>
    %6 = tpu.matmul %4, %5, %cst {dimension_numbers = #tpu.dot_dimension_numbers<[1], [0], [0], [1], [0, 0, 1, 1], [], []>} : vector<8x128xbf16>, vector<128x128xbf16>, vector<8x128xf32> -> vector<8x128xf32>
    %c0_4 = arith.constant 0 : index
    %c0_5 = arith.constant 0 : index
    %7 = vector.load %arg7[%c0_4, %c0_5] : memref<8x128xf32, #tpu.memory_space<vmem>>, vector<8x128xf32>
    tpu.vector_store %arg7[%c0_4, %c0_5], %6 {strides = array<i32>} : memref<8x128xf32, #tpu.memory_space<vmem>>, vector<8x128xf32>,
    return
  }
  func.func @transform_0(%arg0: i32, %arg1: i32) -> (i32, i32) {
    %c0_i32 = arith.constant 0 : i32
    %c0_i32_0 = arith.constant 0 : i32
    return %arg0, %c0_i32 : i32, i32
  }
  func.func @transform_1(%arg0: i32, %arg1: i32) -> (i32, i32) {
    %c0_i32 = arith.constant 0 : i32
    %c0_i32_0 = arith.constant 0 : i32
    %c0_i32_1 = arith.constant 0 : i32
    return %c0_i32, %c0_i32_0 : i32, i32
  }
  func.func @transform_2(%arg0: i32, %arg1: i32) -> (i32, i32) {
    %c0_i32 = arith.constant 0 : i32
    %c0_i32_0 = arith.constant 0 : i32
    %c0_i32_1 = arith.constant 0 : i32
    return %c0_i32, %c0_i32_0 : i32, i32
  }
  func.func @transform_3(%arg0: i32, %arg1: i32) -> (i32, i32) {
    %c0_i32 = arith.constant 0 : i32
    %c0_i32_0 = arith.constant 0 : i32
    %c0_i32_1 = arith.constant 0 : i32
    return %c0_i32, %c0_i32_0 : i32, i32
  }
  func.func @transform_4(%arg0: i32, %arg1: i32) -> (i32, i32) {
    %c0_i32 = arith.constant 0 : i32
    %c0_i32_0 = arith.constant 0 : i32
    return %c0_i32, %arg1 : i32, i32
  }
  func.func @transform_5(%arg0: i32, %arg1: i32) -> (i32, i32) {
    %c0_i32 = arith.constant 0 : i32
    return %arg0, %arg1 : i32, i32
  }
}

</mosaic_0001>

<bundles_post_ra>
// kernel: tpu_custom_call.1
= control target key start
LH: loop header
LB: loop body
LE: loop exit
PB: predicated region body
PF: predicated region fallthrough
CT: control target
= control target key end

     0   :  { %10 = vsyncpa [#allocation4], 0  ;;  %s1424_s0 = inlined_call_operand.hbm [shape: f32[8,256], index: 0, kind: input, shape index: {}]   ;;  %s1425_s1 = inlined_call_operand.hbm [shape: bf16[256,128], index: 1, kind: input, shape index: {}]   ;;  %s1426_s2 = inlined_call_operand.vmem [shape: f32[1,128], index: 2, kind: input, shape index: {}]   ;;  %s1427_s3 = inlined_call_operand.vmem [shape: f32[1,128], index: 3, kind: input, shape index: {}]   ;;  %s1428_s4 = inlined_call_operand.hbm [shape: bf16[128,256], index: 4, kind: input, shape index: {}]   ;;  %s1429_s5 = inlined_call_operand.hbm [shape: f32[8,256], index: 5, kind: output, shape index: {}]  }
   0x1   :  { %11 = vsyncpa [#allocation7], 0 }
   0x2   :  { %12 = vsyncpa [#allocation5], 0 }
   0x3   :  { %14 = vsyncpa [#allocation5 + $0x1], 0  ;;  %s1140_s18 = smov 0   ;;  %s1142_s19 = smov 0  }
   0x4   :  { %s1144_s20 = smov 0   ;;  %s1146_s21 = smov 0  }
   0x5   :  { %s1148_s22 = smov 0   ;;  %s1150_s23 = smov 0  }
   0x6 LB: > { %s1171_s24 = sadd.s32 4294967295, %s1099_s23   ;;  %s715_s25 = sadd.s32 4294967294, %s1099_s23   ;;  %s1099_s23 = sphi %s1150_s23, %s20_s23   ;;  %s1095_s22 = sphi %s1148_s22, %s1462_s22   ;;  %s1091_s21 = sphi %s1146_s21, %s1461_s21   ;;  %s1087_s20 = sphi %s1144_s20, %s1460_s20   ;;  %s1083_s19 = sphi %s1142_s19, %s1459_s19   ;;  %s1079_s18 = sphi %s1140_s18, %s1458_s18  }
   0x7   : > { %p135_p0 = scmp.ne.s32.totalorder %s1087_s20, %s1083_s19  ;;  %p136_p1 = scmp.eq.s32.totalorder %s1099_s23, 0 }
   0x8   : > { %p141_p2 = scmp.ne.s32.totalorder %s1083_s19, %s1079_s18  ;;  %p1430_p3 = scmp.eq.s32.totalorder %s1171_s24, 0 }
   0x9   : > { %p167_p4 = scmp.eq.s32.totalorder %s1171_s24, 1  ;;  %p1182_p5 = por %p136_p1, %p135_p0 }
   0xa   : > { %p173_p6 = scmp.eq.s32.totalorder %s715_s25, 1  ;;  %p1188_p7 = por %p1430_p3, %p141_p2 }
   0xb   : > { %p1192_p8 = por %p167_p4, %p135_p0  ;;  %p716_p10 = scmp.ge.s32.totalorder %s1099_s23, 1 }
   0xc   : > { %s1438_s28 = scalar_select %p1188_p7, 1, 0 }
   0xd   : > { %s1439_s29 = scalar_select %p1192_p8, 1, 0 }
   0xe   : > { %p1196_p9 = por %p173_p6, %p141_p2  ;;  %p180_p11 = scmp.lt.s32.totalorder %s1099_s23, 3 }
   0xf   : > { %s1101_s7 = smov [#allocation3]   ;;  %p838_p1 = scmp.lt.s32.totalorder %s1099_s23, 2 }
  0x10   : > { %s1440_s30 = scalar_select %p1196_p9, 1, 0 }
  0x11   : > { %p1203_p13 = pnand %p716_p10, %p180_p11  ;;  %s196_s8 = sshll.u32 %s1101_s7, 4  ;;  %s197_s8 = int_to_ptr.vmem [resolvable:$true] %s196_s8 }
  0x12   : > { %p1212_p4 = pnand %p838_p1, %p1182_p5  ;;  %s1102_s10 = smov [#allocation6]  }
  0x13   : > { %s1441_s6 = scalar_select %p1203_p13, 1, 0 }
  0x14   : > { %p821_p0 = pneg %p1203_p13  ;;  %s206_s11 = sshll.u32 %s1102_s10, 4  ;;  %s1222_s11 = int_to_ptr.vmem [resolvable:$true] %s206_s11 }
  0x15   : > { %s1442_s9 = scalar_select %p1212_p4, 1, 0 }
  0x16   : > { %p1218_p2 = pnand %p821_p0, %p1430_p3  ;;  %s923_s15 = scalar_lea.hbm %s1424_s0, 256 }
  0x17   : > { %p924_p5 = scmp.ne.s32.totalorder %s1424_s0, %s923_s15  ;;  %p930_p1 = scmp.lt.u32.totalorder %s923_s15, %s1424_s0 }
  0x18   : > { %p925_p6 = pneg %p1218_p2 }
  0x1a   : > { %p926_p10 = pnand %p925_p6, %p924_p5 }
  0x1c   : > { %p927_p11 = pneg %p926_p10 }
  0x1e   : > { %p932_p0 = pnand %p930_p1, %p927_p11 }
  0x20   : > { %935 = shalt.err (!%p932_p0)
}
  0x21   : > { %s936_s7 = scalar_lea.vmem %s197_s8, 256  ;;  %p944_p8 = scmp.lt.s32.totalorder %s197_s8, %s197_s8 }
  0x22   : > { %p937_p12 = scmp.ne.s32.totalorder %s197_s8, %s936_s7  ;;  %p945_p7 = scmp.lt.s32.totalorder %s936_s7, %s936_s7 }
  0x24   : > { %p939_p3 = pnand %p937_p12, %p925_p6  ;;  %p946_p13 = por %p945_p7, %p944_p8 }
  0x26   : > { %p940_p9 = pneg %p939_p3 }
  0x28   : > { %p947_p4 = pnand %p946_p13, %p940_p9 }
  0x2a   : > { %950 = shalt.err (!%p947_p4)
}
  0x2b   : > { %824 = dma.hbm_to_vmem [thread:$0]  (!%p1218_p2), %s1424_s0, 256, %s197_s8, [#allocation4]  }
  0x2c   : > { %s951_s16 = scalar_lea.hbm %s1425_s1, 2048 }
  0x2d   : > { %p952_p3 = scmp.ne.s32.totalorder %s1425_s1, %s951_s16  ;;  %p958_p9 = scmp.lt.u32.totalorder %s951_s16, %s1425_s1 }
  0x2f   : > { %p954_p7 = pnand %p952_p3, %p925_p6 }
  0x31   : > { %p955_p8 = pneg %p954_p7 }
  0x33   : > { %p960_p12 = pnand %p958_p9, %p955_p8 }
  0x35   : > { %963 = shalt.err (!%p960_p12)
}
  0x36   : > { %s964_s8 = scalar_lea.vmem %s1222_s11, 2048  ;;  %p972_p10 = scmp.lt.s32.totalorder %s1222_s11, %s1222_s11 }
  0x37   : > { %p965_p13 = scmp.ne.s32.totalorder %s1222_s11, %s964_s8  ;;  %p973_p11 = scmp.lt.s32.totalorder %s964_s8, %s964_s8 }
  0x39   : > { %p967_p4 = pnand %p965_p13, %p925_p6  ;;  %p974_p1 = por %p973_p11, %p972_p10 }
  0x3b   : > { %p968_p5 = pneg %p967_p4 }
  0x3d   : > { %p975_p0 = pnand %p974_p1, %p968_p5 }
  0x3f   : > { %978 = shalt.err (!%p975_p0)
}
  0x40   : > { %s1435_s10 = smov 64   ;;  %s1436_s13 = smov 4  }
  0x41   : > { %827 = dma.hbm_to_vmem [thread:$0]  (!%p1218_p2), %s1425_s1, 2048, %s1222_s11, [#allocation7], %s1435_s10, %s1435_s10, %s1436_s13  }
  0x42   : > { %s226_s16 = sand.u32 1, %s1099_s23   ;;  %s29_s17 = sadd.s32 1, %s1095_s22 }
  0x43   : > { %s228_s25 = sand.u32 1, %s1087_s20   ;;  %p30_p6 = scmp.ge.s32.totalorder %s29_s17, 2 }
  0x44   : > { %s720_s27 = sshll.u32 %s228_s25, 6  ;;  %s721_s7 = sshll.u32 %s1095_s22, 6 }
  0x45   : > { %s1464_s17 = smov (%p30_p6, %s29_s17), 0  ;;  %s1283_s12 = scalar_lea.hbm %s1428_s4, %s721_s7 }
  0x46   : > { %s230_s11 = scalar_lea.vmem [#allocation8], %s720_s27  ;;  %s125_s15 = ssub.s32 %s1095_s22, %s1464_s17 }
  0x47   : > { %s236_s14 = sshll.u32 %s230_s11, 4  ;;  %p1289_p2 = scmp.eq.s32.totalorder %s125_s15, 0  ;;  %s1287_s14 = int_to_ptr.vmem [resolvable:$true] %s236_s14 }
  0x48   : > { %s1293_s10 = scalar_lea.sflag [#allocation4], %s226_s16  ;;  %s979_s13 = scalar_lea.hbm %s1283_s12, 1024 }
  0x49   : > { %p980_p3 = scmp.ne.s32.totalorder %s1283_s12, %s979_s13  ;;  %p1445_p7 = scmp.ne.s32.totalorder %s1442_s9, 0 }
  0x4a   : > { %s984_s7 = scalar_lea.hbm %s1428_s4, 2048  ;;  %p985_p13 = scmp.lt.u32.totalorder %s1283_s12, %s1428_s4 }
  0x4b   : > { %p981_p8 = pneg %p1445_p7  ;;  %p986_p4 = scmp.lt.u32.totalorder %s984_s7, %s979_s13 }
  0x4c   : > { %p988_p10 = scmp.lt.u32.totalorder %s979_s13, %s1283_s12 }
  0x4d   : > { %p982_p9 = pnand %p981_p8, %p980_p3  ;;  %p987_p5 = por %p986_p4, %p985_p13 }
  0x4f   : > { %p983_p12 = pneg %p982_p9  ;;  %p989_p11 = por %p988_p10, %p987_p5 }
  0x51   : > { %p990_p1 = pnand %p989_p11, %p983_p12 }
  0x53   : > { %993 = shalt.err (!%p990_p1)
}
  0x54   : > { %s994_s16 = scalar_lea.vmem %s1287_s14, 1024  ;;  %s1105_s15 = smov [#allocation8]  }
  0x55   : > { %p995_p0 = scmp.ne.s32.totalorder %s1287_s14, %s994_s16  ;;  %s999_s26 = sshll.u32 %s1105_s15, 4  ;;  %s1000_s26 = int_to_ptr.vmem [resolvable:$false] %s999_s26 }
  0x56   : > { %s1001_s27 = scalar_lea.vmem %s1000_s26, 2048  ;;  %p1002_p9 = scmp.lt.s32.totalorder %s1287_s14, %s1000_s26 }
  0x57   : > { %p997_p6 = pnand %p995_p0, %p981_p8  ;;  %p1003_p13 = scmp.lt.s32.totalorder %s1001_s27, %s994_s16 }
  0x59   : > { %p998_p3 = pneg %p997_p6  ;;  %p1004_p4 = por %p1003_p13, %p1002_p9 }
  0x5b   : > { %p1005_p5 = pnand %p1004_p4, %p998_p3 }
  0x5d   : > { %1008 = shalt.err (!%p1005_p5)
}
  0x5e   : > { %s1106_s13 = smov 128   ;;  %s1446_s7 = smov 4  }
  0x5f   : > { %s1447_s8 = smov 64   ;;  %s1448_s11 = sadd.s32 1, %s1087_s20 }
  0x60   : > { %831 = dma.hbm_to_vmem [thread:$0]  (!%p1445_p7), %s1283_s12, 1024, %s1287_s14, %s1293_s10, %s1106_s13, %s1447_s8, %s1446_s7  }
  0x61   : > { %s1328_s15 = scalar_select %p1289_p2, %s1087_s20, %s1448_s11  }
  0x62   : > { %p1449_p8 = scmp.ne.s32.totalorder %s1441_s6, 0 }
  0x63   : > { %p1450_p12 = scmp.eq.s32.totalorder (!%p1449_p8), %s1171_s24, 0 }
  0x64   : > { %248 = sbr.rel (%p1449_p8) target bundleno = 631 (0x277), region = 40 }
  0x6b   : > { %1062 = dma.done.wait (%p1450_p12), [#allocation4], 256   ;;  %p1451_p10 = pmov %p1450_p12 }
  0x6d   : > { %1064 = vsyncadd (%p1451_p10), [#allocation4], 4294967040  ;;  %p1452_p11 = pmov %p1451_p10 }
  0x6e   : > { %p1453_p1 = pmov %p1451_p10 }
  0x6f   : > { %1066 = dma.done.wait (%p1452_p11), [#allocation7], 2048  }
  0x70   : > { %1068 = vsyncadd (%p1453_p1), [#allocation7], 4294965248  ;;  %s258_s9 = sand.u32 1, %s1171_s24   ;;  %s1342_s10 = sand.u32 1, %s1083_s19  }
  0x71   : > { %s725_s6 = sshll.u32 %s1342_s10, 6  ;;  %s259_s12 = scalar_lea.sflag [#allocation4], %s258_s9 }
  0x72   : > { %s1345_s14 = scalar_lea.vmem [#allocation8], %s725_s6  ;;  %p1454_p2 = scmp.ne.s32.totalorder %s1438_s28, 0 }
  0x74   : > { %1070 = dma.done.wait (%p1454_p2), %s259_s12, 1024  }
  0x75   : > { %1072 = vsyncadd (%p1454_p2), %s259_s12, 4294966272  ;;  %s726_s25 = sshll.u32 %s1342_s10, 3  ;;  %p727_p7 = scmp.ne.s32.totalorder %s1091_s21, 0 }
  0x76   : > { %s1352_s16 = scalar_lea.vmem [#allocation9], %s726_s25  ;;  %v897_v0 = vld [vmem:[#allocation6 + $0x40] sm:$0xff] (!%p727_p7)   ;;  %v899_v2 = vld [vmem:[#allocation6 + $0x48] sm:$0xff] (!%p727_p7)   ;;  %v901_v4 = vld [vmem:[#allocation6 + $0x50] sm:$0xff] (!%p727_p7)  }
  0x77   : > { %293 = sbr.rel (%p727_p7) target bundleno = 371 (0x173), region = 56  ;;  %v898_v1 = vld [vmem:[#allocation6] sm:$0xff] (!%p727_p7)   ;;  %758 = vmatprep.subr.bf16.mxu0 (!%p727_p7), %v897_v0  ;;  %v900_v3 = vld [vmem:[#allocation6 + $0x8] sm:$0xff] (!%p727_p7)   ;;  %v902_v5 = vld [vmem:[#allocation6 + $0x10] sm:$0xff] (!%p727_p7)  }
  0x78   : > { %759 = vmatpush3.bf16.msra.mxu0 (!%p727_p7), %v898_v1  ;;  %v903_v6 = vld [vmem:[#allocation6 + $0x58] sm:$0xff] (!%p727_p7)   ;;  %v905_v8 = vld [vmem:[#allocation6 + $0x60] sm:$0xff] (!%p727_p7)   ;;  %v907_v10 = vld [vmem:[#allocation6 + $0x68] sm:$0xff] (!%p727_p7)  }
  0x79   : > { %760 = vmatprep.subr.bf16.mxu0 (!%p727_p7), %v899_v2  ;;  %v904_v7 = vld [vmem:[#allocation6 + $0x18] sm:$0xff] (!%p727_p7)   ;;  %v906_v9 = vld [vmem:[#allocation6 + $0x20] sm:$0xff] (!%p727_p7)   ;;  %v294_v12 = vld [vmem:[#allocation3] sm:$0xff] (!%p727_p7) }
  0x7a   : > { %v295_v11 = vld [vmem:[#allocation3 + $0x8] sm:$0xff] (!%p727_p7)  ;;  %v908_v15 = vld [vmem:[#allocation6 + $0x28] sm:$0xff] (!%p727_p7)   ;;  %v909_v16 = vld [vmem:[#allocation6 + $0x70] sm:$0xff] (!%p727_p7)   ;;  %v296_v20 = vpack.c.bf16 (!%p727_p7), %v294_v12, %v294_v12 }
  0x7b   : > { %v297_v13 = vpack.c.bf16 (!%p727_p7), %v295_v11, %v295_v11  ;;  %v473_v14 = vadd.f32 (!%p727_p7), %v295_v11, %v294_v12  ;;  %v910_v17 = vld [vmem:[#allocation6 + $0x30] sm:$0xff] (!%p727_p7)   ;;  %v911_v18 = vld [vmem:[#allocation6 + $0x78] sm:$0xff] (!%p727_p7)   ;;  %v745_v24 = vld [vmem:[%s1427_s3] ss:$0 sm:$0xff] (!%p727_p7) }
  0x7c   : > { %761 = vmatpush3.bf16.msra.mxu0 (!%p727_p7), %v900_v3  ;;  %v912_v19 = vld [vmem:[#allocation6 + $0x38] sm:$0xff] (!%p727_p7)   ;;  %v728_v28 = vld [vmem:[%s1426_s2] ss:$0 sm:$0xff] (!%p727_p7) }
  0x7d   : > { %762 = vmatprep.subr.bf16.mxu0 (!%p727_p7), %v901_v4  ;;  %465 = vmatprep.mubr.bf16.mxu0 (!%p727_p7), %v297_v13 }
  0x7e   : > { %474 = vadd.xlane.f32.xlu0 %v473_v14 }
  0x80   : > { %763 = vmatpush3.bf16.msra.mxu0 %v902_v5 }
  0x81   : > { %764 = vmatprep.subr.bf16.mxu0 %v903_v6 }
  0x84   : > { %765 = vmatpush3.bf16.msra.mxu0 %v904_v7 }
  0x85   : > { %766 = vmatprep.subr.bf16.mxu0 %v905_v8 }
  0x88   : > { %767 = vmatpush3.bf16.msra.mxu0 %v906_v9 }
  0x89   : > { %768 = vmatprep.subr.bf16.mxu0 %v907_v10 }
  0x8c   : > { %769 = vmatpush3.bf16.msra.mxu0 %v908_v15 }
  0x8d   : > { %770 = vmatprep.subr.bf16.mxu0 %v909_v16 }
  0x90   : > { %771 = vmatpush3.bf16.msra.mxu0 %v910_v17 }
  0x91   : > { %772 = vmatprep.subr.bf16.mxu0 %v911_v18 }
  0x94   : > { %773 = vmatpush3.bf16.msra.mxu0 %v912_v19 }
  0x97   : > { %466 = vmatmul.mubr.bf16.vlgmr.msra.gmra.mrb[0].mxu0 %v296_v20 }
 0x10b   : > { %v475_v21 = vpop.xlane.xlu0 %474 }
 0x10c   : > { %v476_v22 = vadd.f32 256.0, %v475_v21 }
 0x10e   : > { %v477_v23 = vmul.f32 2.0, %v476_v22 }
 0x110   : > { %v485_v25 = vadd.f32 %v745_v24, %v477_v23 }
 0x112   : > { %913 = vrcp.f32 %v485_v25 }
 0x11c   : > { %v914_v26 = vpop.eup %913 }
 0x11d   : > { %v487_v30 = vmul.f32 %v914_v26, %v745_v24 }
 0x16a   : > { %v774_v27 = vpop.f32.mrb[0].mxu0 }
 0x16b   : > { %v775_v29 = vpop.f32.mrb[1].mxu0 }
 0x16c   : > { %v776_v31 = vadd.f32 %v775_v29, %v774_v27  ;;  %v777_v32 = vpop.f32.mrb[2].mxu0 }
 0x16d   : > { %v778_v33 = vpop.f32.mrb[3].mxu0 }
 0x16e   : > { %v468_v34 = vadd.f32 %v776_v31, %v728_v28 }
 0x170   : > { %v488_v35 = vmul.f32 %v487_v30, %v468_v34 }
 0x172   : > { %489 = vst [vmem:[#allocation2] sm:$0xff] %v488_v35 }
 0x173 PF: > { %v915_v36 = vld [vmem:[%s1345_s14] sm:$0xff]   ;;  %v1107_v37 = vmov 0.0   ;;  %v916_v38 = vld [vmem:[%s1345_s14 + $0x8] sm:$0xff]   ;;  %vm1108_vm0 = vmmov 0   ;;  %v917_v39 = vld [vmem:[%s1345_s14 + $0x10] sm:$0xff]   ;;  %s755_s13 = sshll.u32 %s1091_s21, 7 }
 0x174   : > { %789 = vmatprep.subr.bf16.mxu0 %v1107_v37  ;;  %805 = vmatprep.mubr.msk.bf16.mxu0 %vm1108_vm0, %v1107_v37  ;;  %v918_v40 = vld [vmem:[%s1345_s14 + $0x18] sm:$0xff]   ;;  %v919_v41 = vld [vmem:[%s1345_s14 + $0x20] sm:$0xff]   ;;  %v920_v42 = vld [vmem:[%s1345_s14 + $0x28] sm:$0xff]   ;;  %s613_s7 = sshll.u32 %s1352_s16, 4  ;;  %s1374_s9 = scalar_lea.hbm %s1429_s5, %s755_s13  ;;  %s1376_s7 = int_to_ptr.vmem [resolvable:$true] %s613_s7 }
 0x175   : > { %790 = vmatpush3.bf16.msra.mxu0 %v915_v36  ;;  %v921_v43 = vld [vmem:[%s1345_s14 + $0x30] sm:$0xff]   ;;  %v922_v44 = vld [vmem:[%s1345_s14 + $0x38] sm:$0xff]   ;;  %s598_s6 = scalar_lea.sflag [#allocation5], %s1342_s10  ;;  %s1009_s12 = scalar_lea.vmem %s1376_s7, 128 }
 0x176   : > { %791 = vmatprep.subr.bf16.mxu0 %v1107_v37  ;;  %p1010_p0 = scmp.ne.s32.totalorder %s1376_s7, %s1009_s12  ;;  %p1455_p6 = scmp.ne.s32.totalorder %s1439_s29, 0 }
 0x177   : > { %s1109_s21 = smov [#allocation9]  }
 0x178   : > { %p1011_p3 = pnand %p1010_p0, %p1455_p6  ;;  %s1013_s14 = sshll.u32 %s1109_s21, 4  ;;  %s1014_s14 = int_to_ptr.vmem [resolvable:$false] %s1013_s14 }
 0x179   : > { %792 = vmatpush3.bf16.msra.mxu0 %v916_v38  ;;  %v490_v45 = vld [vmem:[#allocation2] sm:$0xff]  ;;  %s1015_s25 = scalar_lea.vmem %s1014_s14, 256  ;;  %p1016_p13 = scmp.lt.s32.totalorder %s1376_s7, %s1014_s14 }
 0x17a   : > { %793 = vmatprep.subr.bf16.mxu0 %v1107_v37  ;;  %v491_v46 = vpack.c.bf16 %v490_v45, %v490_v45  ;;  %p1012_p9 = pneg %p1011_p3  ;;  %p1017_p4 = scmp.lt.s32.totalorder %s1015_s25, %s1009_s12 }
 0x17c   : > { %p1018_p5 = por %p1017_p4, %p1016_p13 }
 0x17d   : > { %794 = vmatpush3.bf16.msra.mxu0 %v917_v39 }
 0x17e   : > { %795 = vmatprep.subr.bf16.mxu0 %v1107_v37  ;;  %p1019_p8 = pnand %p1018_p5, %p1012_p9 }
 0x181   : > { %796 = vmatpush3.bf16.msra.mxu0 %v918_v40 }
 0x182   : > { %797 = vmatprep.subr.bf16.mxu0 %v1107_v37 }
 0x185   : > { %798 = vmatpush3.bf16.msra.mxu0 %v919_v41 }
 0x186   : > { %799 = vmatprep.subr.bf16.mxu0 %v1107_v37 }
 0x189   : > { %800 = vmatpush3.bf16.msra.mxu0 %v920_v42 }
 0x18a   : > { %801 = vmatprep.subr.bf16.mxu0 %v1107_v37 }
 0x18d   : > { %802 = vmatpush3.bf16.msra.mxu0 %v921_v43 }
 0x18e   : > { %803 = vmatprep.subr.bf16.mxu0 %v1107_v37 }
 0x191   : > { %804 = vmatpush3.bf16.msra.mxu0 %v922_v44 }
 0x194   : > { %806 = vmatmul.mubr.bf16.vlgmr.msra.gmra.mrb[0].mxu0 %v491_v46 }
 0x267   : > { %v590_v47 = vpop.f32.mrb[0].mxu0 }
 0x268   : > { %596 = vst [vmem:[%s1352_s16] sm:$0xff] %v590_v47  ;;  %v807_v48 = vpop.f32.mrb[1].mxu0 }
 0x269   : > { %v593_v49 = vpop.f32.mrb[2].mxu0 }
 0x26a   : > { %1022 = shalt.err (!%p1019_p8)
}
 0x26b   : > { %s1023_s10 = scalar_lea.hbm %s1374_s9, 128  ;;  %s1027_s28 = scalar_lea.hbm %s1429_s5, 256 }
 0x26c   : > { %p1024_p12 = scmp.ne.s32.totalorder %s1374_s9, %s1023_s10  ;;  %p1028_p1 = scmp.lt.u32.totalorder %s1374_s9, %s1429_s5 }
 0x26d   : > { %p1029_p2 = scmp.lt.u32.totalorder %s1027_s28, %s1023_s10  ;;  %p1031_p0 = scmp.lt.u32.totalorder %s1023_s10, %s1374_s9 }
 0x26e   : > { %p1025_p10 = pnand %p1024_p12, %p1455_p6 }
 0x26f   : > { %p1030_p7 = por %p1029_p2, %p1028_p1 }
 0x270   : > { %p1026_p11 = pneg %p1025_p10 }
 0x271   : > { %p1032_p3 = por %p1031_p0, %p1030_p7 }
 0x273   : > { %p1033_p9 = pnand %p1032_p3, %p1026_p11 }
 0x275   : > { %1036 = shalt.err (!%p1033_p9)
}
 0x276   : > { %819 = dma.vmem_to_hbm [thread:$0]  (%p1455_p6), %s1376_s7, 128, %s1374_s9, %s598_s6   ;;  %v808_v50 = vpop.f32.mrb[3].mxu0 }
 0x277 PF: > { %s625_s13 = sand.u32 1, %s1079_s18   ;;  %p1456_p13 = scmp.ne.s32.totalorder %s1440_s30, 0 }
 0x278   : > { %p1457_p4 = scmp.ge.s32.totalorder %s1099_s23, 2  ;;  %s626_s8 = scalar_lea.sflag [#allocation5], %s625_s13 }
 0x27a   : > { %p833_p5 = pnand %p1457_p4, %p1456_p13 }
 0x27c   : > { %1074 = dma.done.wait (!%p833_p5), %s626_s8, 128  }
 0x27d   : > { %1076 = vsyncadd (!%p833_p5), %s626_s8, 4294967168  ;;  %s20_s23 = sadd.s32 1, %s1099_s23   ;;  %s1458_s18 = smov %s1083_s19 }
 0x27e   : > { %p17_p8 = scmp.ge.s32.totalorder %s20_s23, 4   ;;  %s1459_s19 = smov %s1087_s20 }
 0x27f   : > { %s1460_s20 = smov %s1328_s15  ;;  %s1461_s21 = smov %s1095_s22 }
 0x280   : > { %s1462_s22 = smov %s1464_s17  ;;  %19 = sbr.rel (!%p17_p8) target bundleno = 6 (0x6), region = 97 }
 0x287   :  { %631 = vsyncpa [#allocation4], 1 }
 0x288   :  { %633 = vsyncpa [#allocation4 + $0x1], 1 }
 0x289   :  { %634 = vsyncpa [#allocation7], 1 }
 0x28a   :  { %635 = vsyncpa [#allocation5], 1 }
 0x28b   :  { %637 = vsyncpa [#allocation5 + $0x1], 1 }

</bundles_post_ra>
